<compile_context>
chip_gen: v6e
topology: v6e:2x2x1
jax: 0.10.0
libtpu: 0.0.40
codegen_flags: <defaults>
</compile_context>

<pallas_src>
import jax
import jax.numpy as jnp
from jax.experimental import pallas as pl
from jax.experimental.pallas import tpu as pltpu


def _round_up(x, m):
    return ((x + m - 1) // m) * m


def _gl_kernel_multi_k(x_ref, w_ref, b_ref, o_ref, acc_ref):
    # x_ref:   (TM, TK)   -- batch tile x K tile of this group's input columns
    # w_ref:   (TK, GOP)  -- this group's weight K-slab (group dim squeezed)
    # b_ref:   (1, GOP)   -- this group's bias (group dim squeezed)
    # o_ref:   (TM, GOP)  -- this group's slice of the output, this batch tile
    # acc_ref: (TM, GOP)  -- f32 accumulator, resident across the K axis
    k = pl.program_id(2)

    @pl.when(k == 0)
    def _():
        acc_ref[...] = jnp.zeros_like(acc_ref)

    acc_ref[...] += jnp.dot(
        x_ref[...], w_ref[...], preferred_element_type=jnp.float32
    )

    @pl.when(k == pl.num_programs(2) - 1)
    def _():
        o_ref[...] = (
            acc_ref[...] + b_ref[...].astype(jnp.float32)
        ).astype(o_ref.dtype)


def _gl_kernel_single_k(x_ref, w_ref, b_ref, o_ref):
    # Whole group contraction in one MXU pass: no scratch accumulator needed.
    acc = jnp.dot(x_ref[...], w_ref[...], preferred_element_type=jnp.float32)
    o_ref[...] = (acc + b_ref[...].astype(jnp.float32)).astype(o_ref.dtype)


def grouped_linear(x, w_stack, b_stack, num_groups, *, tm_cap=256, tk_cap=512):
    """x: (B, in_features); w_stack: (G, gi, go); b_stack: (G, 1, go)."""
    B, in_features = x.shape
    G, gi, go = w_stack.shape
    assert G == num_groups and gi * G == in_features
    assert b_stack.shape == (G, 1, go)
    out_dtype = x.dtype

    # ---- pad per-group feature dims to lane (128) multiples ------------------
    gi_p = _round_up(gi, 128)
    go_p = _round_up(go, 128)
    if gi_p != gi:
        xg = jnp.pad(x.reshape(B, G, gi), ((0, 0), (0, 0), (0, gi_p - gi)))
        x = xg.reshape(B, G * gi_p)
        w_stack = jnp.pad(w_stack, ((0, 0), (0, gi_p - gi), (0, 0)))
    if go_p != go:
        w_stack = jnp.pad(w_stack, ((0, 0), (0, 0), (0, go_p - go)))
        b_stack = jnp.pad(b_stack, ((0, 0), (0, 0), (0, go_p - go)))

    # ---- tile sizes -----------------------------------------------------------
    # Batch tile: up to tm_cap rows (MXU-friendly), at least the padded batch.
    TM = min(tm_cap, _round_up(B, 8))
    B_pad = _round_up(B, TM)
    # Contraction tile: largest 128-multiple divisor of gi_p not exceeding tk_cap.
    if gi_p <= tk_cap:
        TK = gi_p
    else:
        TK = 128
        for cand in range(tk_cap - tk_cap % 128, 127, -128):
            if gi_p % cand == 0:
                TK = cand
                break
    num_k = gi_p // TK
    num_m = B_pad // TM

    x_p = x if B_pad == B else jnp.pad(x, ((0, B_pad - B), (0, 0)))

    # ---- VMEM budget (double-buffered streams + f32 accumulator) -------------
    isz = lambda a: jnp.dtype(a.dtype).itemsize
    vmem_bytes = (
        2 * TM * TK * isz(x_p)               # x tiles (double buffered)
        + 2 * TK * go_p * isz(w_stack)       # weight tiles
        + 2 * go_p * isz(b_stack)            # bias
        + 2 * TM * go_p * isz(x_p)           # output tiles
        + TM * go_p * 4                      # f32 accumulator scratch
    )
    vmem_limit = int(min(100 * 2**20, max(32 * 2**20, 2 * vmem_bytes)))

    cost = pl.CostEstimate(
        flops=2 * B_pad * G * gi_p * go_p,
        transcendentals=0,
        bytes_accessed=(
            B_pad * G * gi_p * isz(x_p)
            + w_stack.size * isz(w_stack)
            + b_stack.size * isz(b_stack)
            + B_pad * G * go_p * isz(x_p)
        ),
    )

    out_shape = jax.ShapeDtypeStruct((B_pad, G * go_p), out_dtype)

    if num_k > 1:
        out = pl.pallas_call(
            _gl_kernel_multi_k,
            out_shape=out_shape,
            grid_spec=pltpu.PrefetchScalarGridSpec(
                num_scalar_prefetch=0,
                # Reduction axis (K) innermost; weight/bias block indices depend
                # only on (g, k), never on the batch tile.
                grid=(G, num_m, num_k),
                in_specs=[
                    # x[:, g*gi_p + k*TK : g*gi_p + (k+1)*TK] for batch tile m
                    pl.BlockSpec((TM, TK), lambda g, m, k: (m, g * num_k + k)),
                    # group g's weight K-slab, leading group dim squeezed away
                    pl.BlockSpec((pl.Squeezed(), TK, go_p), lambda g, m, k: (g, k, 0)),
                    # group g's bias
                    pl.BlockSpec((pl.Squeezed(), 1, go_p), lambda g, m, k: (g, 0, 0)),
                ],
                # out[:, g*go_p:(g+1)*go_p] for batch tile m (lane-dense)
                out_specs=pl.BlockSpec((TM, go_p), lambda g, m, k: (m, g)),
                scratch_shapes=[pltpu.VMEM((TM, go_p), jnp.float32)],
            ),
            compiler_params=pltpu.CompilerParams(
                dimension_semantics=("parallel", "parallel", "arbitrary"),
                vmem_limit_bytes=vmem_limit,
            ),
            cost_estimate=cost,
        )(x_p, w_stack, b_stack)
    else:
        # Whole group contraction fits in one tile: 2-D grid, no accumulator,
        # weight slab stays VMEM-resident across batch tiles.
        out = pl.pallas_call(
            _gl_kernel_single_k,
            out_shape=out_shape,
            grid_spec=pltpu.PrefetchScalarGridSpec(
                num_scalar_prefetch=0,
                grid=(G, num_m),
                in_specs=[
                    pl.BlockSpec((TM, TK), lambda g, m: (m, g)),
                    pl.BlockSpec((pl.Squeezed(), TK, go_p), lambda g, m: (g, 0, 0)),
                    pl.BlockSpec((pl.Squeezed(), 1, go_p), lambda g, m: (g, 0, 0)),
                ],
                out_specs=pl.BlockSpec((TM, go_p), lambda g, m: (m, g)),
            ),
            compiler_params=pltpu.CompilerParams(
                dimension_semantics=("parallel", "parallel"),
                vmem_limit_bytes=vmem_limit,
            ),
            cost_estimate=cost,
        )(x_p, w_stack, b_stack)

    out = out[:B] if B_pad != B else out
    if go_p != go:
        out = out.reshape(B, G, go_p)[:, :, :go].reshape(B, G * go)
    return out


def _reference(x, w_stack, b_stack, num_groups):
    G, gi, go = w_stack.shape
    return jnp.concatenate(
        [x[:, g * gi:(g + 1) * gi] @ w_stack[g] + b_stack[g] for g in range(G)],
        axis=1,
    )


if __name__ == "__main__":
    key = jax.random.PRNGKey(0)

    # --- case 1: lane-aligned group sizes (matches the module's typical use) --
    batch = 8
    in_features = 256
    out_features = 256
    num_groups = 2
    gi = in_features // num_groups
    go = out_features // num_groups

    kx, kw, kb, kx2, kw2, kb2 = jax.random.split(key, 6)
    x = jax.random.normal(kx, (batch, in_features), dtype=jnp.float32)
    # nn.Linear init mimic: U(-1/sqrt(gi), 1/sqrt(gi)); weights stored (gi, go).
    bound = 1.0 / (gi ** 0.5)
    w_stack = jax.random.uniform(
        kw, (num_groups, gi, go), minval=-bound, maxval=bound, dtype=jnp.float32
    )
    b_stack = jax.random.uniform(
        kb, (num_groups, 1, go), minval=-bound, maxval=bound, dtype=jnp.float32
    )

    out = jax.block_until_ready(grouped_linear(x, w_stack, b_stack, num_groups))
    ref = _reference(x, w_stack, b_stack, num_groups)
    assert out.shape == (batch, out_features)
    assert jnp.allclose(out, ref, atol=1e-5, rtol=1e-5)

    # --- case 2: unaligned group sizes (exercises the padding path) ----------
    in_features2, out_features2, num_groups2 = 96, 64, 2
    gi2 = in_features2 // num_groups2
    go2 = out_features2 // num_groups2
    x2 = jax.random.normal(kx2, (batch, in_features2), dtype=jnp.float32)
    bound2 = 1.0 / (gi2 ** 0.5)
    w_stack2 = jax.random.uniform(
        kw2, (num_groups2, gi2, go2), minval=-bound2, maxval=bound2, dtype=jnp.float32
    )
    b_stack2 = jax.random.uniform(
        kb2, (num_groups2, 1, go2), minval=-bound2, maxval=bound2, dtype=jnp.float32
    )
    out2 = jax.block_until_ready(grouped_linear(x2, w_stack2, b_stack2, num_groups2))
    ref2 = _reference(x2, w_stack2, b_stack2, num_groups2)
    assert out2.shape == (batch, out_features2)
    assert jnp.allclose(out2, ref2, atol=1e-5, rtol=1e-5)

    print("KERNEL_OK")
</pallas_src>

<mosaic_0001>
module attributes {stable_mosaic.version = 11 : i64} {
  func.func @_gl_kernel_single_k(%arg0: i32, %arg1: i32, %arg2: memref<8x128xf32, #tpu.memory_space<vmem>>, %arg3: memref<1x128x128xf32, #tpu.memory_space<vmem>>, %arg4: memref<1x1x128xf32, #tpu.memory_space<vmem>>, %arg5: memref<8x128xf32, #tpu.memory_space<vmem>>) attributes {dimension_semantics = [#tpu.dimension_semantics<parallel>, #tpu.dimension_semantics<parallel>], iteration_bounds = array<i64: 2, 1>, scalar_prefetch = 0 : i64, scratch_operands = 0 : i64, tpu.core_type = #tpu.core_type<tc>, window_params = [{transform_indices = @transform_0, window_bounds = array<i64: 8, 128>}, {transform_indices = @transform_1, window_bounds = array<i64: 1, 128, 128>}, {transform_indices = @transform_2, window_bounds = array<i64: 1, 1, 128>}, {transform_indices = @transform_3, window_bounds = array<i64: 8, 128>}]} {
    %c0 = arith.constant 0 : index
    %c0_0 = arith.constant 0 : index
    %0 = vector.load %arg2[%c0, %c0_0] : memref<8x128xf32, #tpu.memory_space<vmem>>, vector<8x128xf32>
    %c0_1 = arith.constant 0 : index
    %c0_2 = arith.constant 0 : index
    %c0_3 = arith.constant 0 : index
    %1 = vector.load %arg3[%c0_1, %c0_2, %c0_3] : memref<1x128x128xf32, #tpu.memory_space<vmem>>, vector<1x128x128xf32>
    %2 = vector.shape_cast %1 : vector<1x128x128xf32> to vector<128x128xf32>
    %cst = arith.constant dense<0.000000e+00> : vector<8x128xf32>
    %3 = tpu.matmul %0, %2, %cst {dimension_numbers = #tpu.dot_dimension_numbers<[1], [0], [0], [1], [0, 0, 1, 1], [], []>} : vector<8x128xf32>, vector<128x128xf32>, vector<8x128xf32> -> vector<8x128xf32>
    %c0_4 = arith.constant 0 : index
    %c0_5 = arith.constant 0 : index
    %c0_6 = arith.constant 0 : index
    %4 = vector.load %arg4[%c0_4, %c0_5, %c0_6] : memref<1x1x128xf32, #tpu.memory_space<vmem>>, vector<1x1x128xf32>
    %5 = vector.shape_cast %4 : vector<1x1x128xf32> to vector<1x128xf32>
    %6 = vector.broadcast %5 : vector<1x128xf32> to vector<8x128xf32>
    %7 = arith.addf %3, %6 : vector<8x128xf32>
    %c0_7 = arith.constant 0 : index
    %c0_8 = arith.constant 0 : index
    %8 = vector.load %arg5[%c0_7, %c0_8] : memref<8x128xf32, #tpu.memory_space<vmem>>, vector<8x128xf32>
    tpu.vector_store %arg5[%c0_7, %c0_8], %7 {strides = array<i32>} : memref<8x128xf32, #tpu.memory_space<vmem>>, vector<8x128xf32>,
    return
  }
  func.func @transform_0(%arg0: i32, %arg1: i32) -> (i32, i32) {
    %c0_i32 = arith.constant 0 : i32
    return %arg1, %arg0 : i32, i32
  }
  func.func @transform_1(%arg0: i32, %arg1: i32) -> (i32, i32, i32) {
    %c0_i32 = arith.constant 0 : i32
    %c0_i32_0 = arith.constant 0 : i32
    %c0_i32_1 = arith.constant 0 : i32
    return %arg0, %c0_i32, %c0_i32_0 : i32, i32, i32
  }
  func.func @transform_2(%arg0: i32, %arg1: i32) -> (i32, i32, i32) {
    %c0_i32 = arith.constant 0 : i32
    %c0_i32_0 = arith.constant 0 : i32
    %c0_i32_1 = arith.constant 0 : i32
    return %arg0, %c0_i32, %c0_i32_0 : i32, i32, i32
  }
  func.func @transform_3(%arg0: i32, %arg1: i32) -> (i32, i32) {
    %c0_i32 = arith.constant 0 : i32
    return %arg1, %arg0 : i32, i32
  }
}

</mosaic_0001>

<bundles_post_ra>
// kernel: tpu_custom_call.1
= control target key start
LH: loop header
LB: loop body
LE: loop exit
PB: predicated region body
PF: predicated region fallthrough
CT: control target
= control target key end

     0   :  { %8 = vsyncpa [#allocation3], 0  ;;  %s994_s0 = inlined_call_operand.hbm [shape: f32[8,256], index: 0, kind: input, shape index: {}]   ;;  %s995_s1 = inlined_call_operand.hbm [shape: f32[2,128,128], index: 1, kind: input, shape index: {}]   ;;  %s996_s2 = inlined_call_operand.vmem [shape: f32[2,1,128], index: 2, kind: input, shape index: {}]   ;;  %s997_s3 = inlined_call_operand.hbm [shape: f32[8,256], index: 3, kind: output, shape index: {}]  }
   0x1   :  { %10 = vsyncpa [#allocation3 + $0x1], 0 }
   0x2   :  { %11 = vsyncpa [#allocation6], 0 }
   0x3   :  { %13 = vsyncpa [#allocation6 + $0x1], 0 }
   0x4   :  { %14 = vsyncpa [#allocation4], 0 }
   0x5   :  { %16 = vsyncpa [#allocation4 + $0x1], 0  ;;  %s794_s12 = smov 0   ;;  %s796_s13 = smov 0  }
   0x6   :  { %s798_s14 = smov 0   ;;  %s800_s15 = smov 0  }
   0x7   :  { %s802_s16 = smov 0   ;;  %s804_s17 = smov 0  }
   0x8 LB: > { %s483_s18 = sadd.s32 4294967295, %s765_s17   ;;  %s484_s19 = sadd.s32 4294967294, %s765_s17   ;;  %s765_s17 = sphi %s804_s17, %s22_s17   ;;  %s761_s16 = sphi %s802_s16, %s1009_s16   ;;  %s757_s15 = sphi %s800_s15, %s1008_s15   ;;  %s753_s14 = sphi %s798_s14, %s1007_s14   ;;  %s749_s13 = sphi %s796_s13, %s1006_s13   ;;  %s745_s12 = sphi %s794_s12, %s1005_s12  }
   0x9   : > { %s34_s20 = sadd.s32 1, %s761_s16  ;;  %s43_s21 = sadd.s32 1, %s753_s14 }
   0xa   : > { %p36_p0 = scmp.ge.s32.totalorder %s34_s20, 2  ;;  %p50_p1 = scmp.ne.s32.totalorder %s753_s14, %s749_s13 }
   0xb   : > { %p51_p2 = scmp.eq.s32.totalorder %s765_s17, 0  ;;  %p56_p3 = scmp.ne.s32.totalorder %s749_s13, %s745_s12 }
   0xc   : > { %s1011_s20 = smov (%p36_p0, %s34_s20), 0  ;;  %p57_p5 = scmp.eq.s32.totalorder %s483_s18, 0 }
   0xd   : > { %p835_p4 = por %p51_p2, %p50_p1  ;;  %s39_s23 = ssub.s32 %s761_s16, %s1011_s20 }
   0xe   : > { %p134_p6 = scmp.eq.s32.totalorder %s483_s18, 1  ;;  %p41_p7 = scmp.eq.s32.totalorder %s39_s23, 0 }
   0xf   : > { %p841_p8 = por %p57_p5, %p56_p3  ;;  %p140_p10 = scmp.eq.s32.totalorder %s484_s19, 1 }
  0x10   : > { %p845_p9 = por %p134_p6, %p50_p1  ;;  %p571_p13 = scmp.lt.s32.totalorder %s765_s17, 2 }
  0x11   : > { %s850_s26 = scalar_select %p41_p7, %s753_s14, %s43_s21  }
  0x12   : > { %p852_p11 = por %p140_p10, %p56_p3  ;;  %s859_s28 = sand.u32 1, %s753_s14  }
  0x13   : > { %s487_s29 = sshll.u32 %s859_s28, 3  ;;  %s488_s30 = sshll.u32 %s761_s16, 7 }
  0x14   : > { %s171_s6 = scalar_lea.hbm %s994_s0, %s488_s30  ;;  %s164_s7 = scalar_lea.vmem [#allocation2], %s487_s29 }
  0x15   : > { %s173_s8 = sshll.u32 %s164_s7, 4  ;;  %p868_p0 = pnand %p571_p13, %p835_p4  ;;  %s174_s8 = int_to_ptr.vmem [resolvable:$true] %s173_s8 }
  0x16   : > { %p492_p1 = scmp.ge.s32.totalorder %s765_s17, 1  ;;  %p205_p2 = scmp.lt.s32.totalorder %s765_s17, 3 }
  0x17   : > { %s161_s10 = scalar_lea.sflag [#allocation3], %s859_s28  ;;  %p627_p3 = pneg %p868_p0 }
  0x18   : > { %s638_s11 = scalar_lea.vmem %s174_s8, 128  ;;  %s767_s18 = smov [#allocation2]  }
  0x19   : > { %p639_p5 = scmp.ne.s32.totalorder %s174_s8, %s638_s11  ;;  %s643_s19 = sshll.u32 %s767_s18, 4  ;;  %s644_s19 = int_to_ptr.vmem [resolvable:$false] %s643_s19 }
  0x1a   : > { %s645_s21 = scalar_lea.vmem %s644_s19, 256  ;;  %p646_p4 = scmp.lt.s32.totalorder %s174_s8, %s644_s19 }
  0x1b   : > { %p641_p6 = pnand %p639_p5, %p627_p3  ;;  %p647_p10 = scmp.lt.s32.totalorder %s645_s21, %s638_s11 }
  0x1d   : > { %p642_p7 = pneg %p641_p6  ;;  %p648_p13 = por %p647_p10, %p646_p4 }
  0x1f   : > { %p649_p12 = pnand %p648_p13, %p642_p7 }
  0x21   : > { %652 = shalt.err (!%p649_p12)
}
  0x22   : > { %563 = dma.hbm_to_vmem [thread:$0]  (!%p868_p0), %s171_s6, 128, %s174_s8, %s161_s10  }
  0x23   : > { %p886_p5 = pnand %p492_p1, %p205_p2  ;;  %s489_s23 = sshll.u32 %s859_s28, 7 }
  0x24   : > { %s501_s29 = sshll.u32 %s761_s16, 11  ;;  %s184_s7 = scalar_lea.vmem [#allocation5], %s489_s23 }
  0x25   : > { %s190_s5 = scalar_lea.hbm %s995_s1, %s501_s29  ;;  %s191_s11 = sshll.u32 %s184_s7, 4  ;;  %s192_s11 = int_to_ptr.vmem [resolvable:$true] %s191_s11 }
  0x26   : > { %s181_s18 = scalar_lea.sflag [#allocation6], %s859_s28  ;;  %s666_s19 = scalar_lea.vmem %s192_s11, 2048 }
  0x27   : > { %p667_p12 = scmp.ne.s32.totalorder %s192_s11, %s666_s19  ;;  %s768_s6 = smov [#allocation5]  }
  0x28   : > { %s671_s8 = sshll.u32 %s768_s6, 4  ;;  %s672_s8 = int_to_ptr.vmem [resolvable:$false] %s671_s8 }
  0x29   : > { %p669_p6 = pnand %p667_p12, %p627_p3  ;;  %s673_s10 = scalar_lea.vmem %s672_s8, 4096 }
  0x2a   : > { %p674_p1 = scmp.lt.s32.totalorder %s192_s11, %s672_s8  ;;  %p675_p2 = scmp.lt.s32.totalorder %s673_s10, %s666_s19 }
  0x2b   : > { %p670_p7 = pneg %p669_p6 }
  0x2c   : > { %p676_p4 = por %p675_p2, %p674_p1 }
  0x2e   : > { %p677_p10 = pnand %p676_p4, %p670_p7 }
  0x30   : > { %680 = shalt.err (!%p677_p10)
}
  0x31   : > { %s769_s21 = smov 128   ;;  %s770_s23 = smov 8  }
  0x32   : > { %566 = dma.hbm_to_vmem [thread:$0]  (!%p868_p0), %s190_s5, 2048, %s192_s11, %s181_s18, %s769_s21, %s769_s21, %s770_s23  }
  0x33   : > { %209 = sbr.rel (%p886_p5) target bundleno = 301 (0x12d), region = 32  ;;  %s904_s28 = sand.u32 (!%p886_p5), 1, %s749_s13  }
  0x34   : > { %s493_s29 = sshll.u32 (!%p886_p5), %s904_s28, 3  ;;  %s212_s30 = scalar_lea.sflag (!%p886_p5), [#allocation3], %s904_s28 }
  0x35   : > { %s910_s4 = scalar_lea.vmem (!%p886_p5), [#allocation2], %s493_s29 }
  0x38   : > { %732 = dma.done.wait (%p841_p8), %s212_s30, 128  }
  0x39   : > { %734 = vsyncadd (%p841_p8), %s212_s30, 4294967168  ;;  %s494_s9 = sshll.u32 %s904_s28, 7  ;;  %s221_s22 = scalar_lea.sflag [#allocation6], %s904_s28 }
  0x3a   : > { %s918_s5 = scalar_lea.vmem [#allocation5], %s494_s9 }
  0x3b   : > { %736 = dma.done.wait (%p841_p8), %s221_s22, 2048  }
  0x3c   : > { %738 = vsyncadd (%p841_p8), %s221_s22, 4294965248  ;;  %v771_v0 = vmov 0.0   ;;  %vm772_vm0 = vmmov 0   ;;  %v274_v1 = vld [vmem:[%s918_s5 + $0x78] sm:$0xff]  ;;  %v273_v2 = vld [vmem:[%s918_s5 + $0x70] sm:$0xff]  ;;  %p255_p8 = scmp.lt.s32.totalorder %s757_s15, 1 }
  0x3d   : > { %519 = vmatprep.subr.mxu0 %v771_v0  ;;  %551 = vmatprep.mubr.msk.f32.mxu0 %vm772_vm0, %v771_v0  ;;  %v272_v3 = vld [vmem:[%s918_s5 + $0x68] sm:$0xff]  ;;  %v271_v4 = vld [vmem:[%s918_s5 + $0x60] sm:$0xff]  ;;  %v270_v5 = vld [vmem:[%s918_s5 + $0x58] sm:$0xff]  ;;  %s498_s19 = sshll.u32 %s757_s15, 7  ;;  %s254_s6 = scalar_lea.vmem [#allocation7], %s493_s29 }
  0x3e   : > { %520 = vmatpush3.msra.mxu0 %v274_v1  ;;  %v269_v6 = vld [vmem:[%s918_s5 + $0x50] sm:$0xff]  ;;  %v268_v7 = vld [vmem:[%s918_s5 + $0x48] sm:$0xff]  ;;  %v267_v8 = vld [vmem:[%s918_s5 + $0x40] sm:$0xff]  ;;  %s256_s24 = scalar_select %p255_p8, %s757_s15, 1 }
  0x3f   : > { %521 = vmatprep.subr.mxu0 %v771_v0  ;;  %v266_v9 = vld [vmem:[%s918_s5 + $0x38] sm:$0xff]  ;;  %v265_v10 = vld [vmem:[%s918_s5 + $0x30] sm:$0xff]  ;;  %v264_v11 = vld [vmem:[%s918_s5 + $0x28] sm:$0xff]  ;;  %s369_s8 = sshll.u32 %s254_s6, 4  ;;  %s952_s23 = scalar_lea.hbm %s997_s3, %s498_s19  ;;  %s370_s8 = int_to_ptr.vmem [resolvable:$true] %s369_s8 }
  0x40   : > { %522 = vmatpush3.msra.mxu0 %v273_v2  ;;  %v263_v12 = vld [vmem:[%s918_s5 + $0x20] sm:$0xff]  ;;  %v262_v13 = vld [vmem:[%s918_s5 + $0x18] sm:$0xff]  ;;  %v261_v14 = vld [vmem:[%s918_s5 + $0x10] sm:$0xff]  ;;  %s257_s18 = scalar_lea.vmem %s996_s2, %s256_s24  ;;  %s354_s30 = scalar_lea.sflag [#allocation4], %s904_s28 }
  0x41   : > { %523 = vmatprep.subr.mxu0 %v771_v0  ;;  %v260_v15 = vld [vmem:[%s918_s5 + $0x8] sm:$0xff]  ;;  %v259_v16 = vld [vmem:[%s918_s5] sm:$0xff]  ;;  %v258_v17 = vld [vmem:[%s910_s4] sm:$0xff]  ;;  %s681_s4 = scalar_lea.vmem %s370_s8, 128  ;;  %s773_s15 = smov [#allocation7]  }
  0x42   : > { %524 = vmatpush3.msra.mxu0 %v272_v3  ;;  %v496_v18 = vld [vmem:[%s257_s18] ss:$0 sm:$0xff]  ;;  %p682_p0 = scmp.ne.s32.totalorder %s370_s8, %s681_s4  ;;  %s685_s9 = sshll.u32 %s773_s15, 4  ;;  %s686_s9 = int_to_ptr.vmem [resolvable:$false] %s685_s9 }
  0x43   : > { %525 = vmatprep.subr.mxu0 %v771_v0  ;;  %s687_s29 = scalar_lea.vmem %s686_s9, 256  ;;  %p688_p5 = scmp.lt.s32.totalorder %s370_s8, %s686_s9 }
  0x44   : > { %526 = vmatpush3.msra.mxu0 %v271_v4  ;;  %p683_p3 = pnand %p682_p0, %p845_p9  ;;  %p689_p12 = scmp.lt.s32.totalorder %s687_s29, %s681_s4 }
  0x45   : > { %527 = vmatprep.subr.mxu0 %v771_v0 }
  0x46   : > { %528 = vmatpush3.msra.mxu0 %v270_v5  ;;  %p684_p13 = pneg %p683_p3  ;;  %p690_p6 = por %p689_p12, %p688_p5 }
  0x47   : > { %529 = vmatprep.subr.mxu0 %v771_v0 }
  0x48   : > { %530 = vmatpush3.msra.mxu0 %v269_v6  ;;  %p691_p7 = pnand %p690_p6, %p684_p13 }
  0x49   : > { %531 = vmatprep.subr.mxu0 %v771_v0 }
  0x4a   : > { %532 = vmatpush3.msra.mxu0 %v268_v7 }
  0x4b   : > { %533 = vmatprep.subr.mxu0 %v771_v0 }
  0x4c   : > { %534 = vmatpush3.msra.mxu0 %v267_v8 }
  0x4d   : > { %535 = vmatprep.subr.mxu0 %v771_v0 }
  0x4e   : > { %536 = vmatpush3.msra.mxu0 %v266_v9 }
  0x4f   : > { %537 = vmatprep.subr.mxu0 %v771_v0 }
  0x50   : > { %538 = vmatpush3.msra.mxu0 %v265_v10 }
  0x51   : > { %539 = vmatprep.subr.mxu0 %v771_v0 }
  0x52   : > { %540 = vmatpush3.msra.mxu0 %v264_v11 }
  0x53   : > { %541 = vmatprep.subr.mxu0 %v771_v0 }
  0x54   : > { %542 = vmatpush3.msra.mxu0 %v263_v12 }
  0x55   : > { %543 = vmatprep.subr.mxu0 %v771_v0 }
  0x56   : > { %544 = vmatpush3.msra.mxu0 %v262_v13 }
  0x57   : > { %545 = vmatprep.subr.mxu0 %v771_v0 }
  0x58   : > { %546 = vmatpush3.msra.mxu0 %v261_v14 }
  0x59   : > { %547 = vmatprep.subr.mxu0 %v771_v0 }
  0x5a   : > { %548 = vmatpush3.msra.mxu0 %v260_v15 }
  0x5b   : > { %549 = vmatprep.subr.mxu0 %v771_v0 }
  0x5c   : > { %550 = vmatpush3.msra.mxu0 %v259_v16 }
  0x5d   : > { %552 = vmatmul.mubr.f32.vlgmr.msra.gmra.mxu0 %v258_v17 }
 0x11d   : > { %v348_v19 = vpop.f32.mrf.mxu0 }
 0x11e   : > { %v349_v20 = vadd.f32 %v496_v18, %v348_v19 }
 0x11f   : > { %v553_v21 = vpop.f32.mrf.mxu0 }
 0x120   : > { %352 = vst [vmem:[%s254_s6] sm:$0xff] %v349_v20 }
 0x121   : > { %694 = shalt.err (!%p691_p7)
}
 0x122   : > { %s695_s22 = scalar_lea.hbm %s952_s23, 128  ;;  %s699_s24 = scalar_lea.hbm %s997_s3, 256 }
 0x123   : > { %p696_p1 = scmp.ne.s32.totalorder %s952_s23, %s695_s22  ;;  %p700_p10 = scmp.lt.s32.totalorder %s952_s23, %s997_s3 }
 0x124   : > { %p701_p8 = scmp.lt.s32.totalorder %s699_s24, %s695_s22 }
 0x125   : > { %p697_p2 = pnand %p696_p1, %p845_p9 }
 0x126   : > { %p702_p0 = por %p701_p8, %p700_p10 }
 0x127   : > { %p698_p4 = pneg %p697_p2 }
 0x129   : > { %p703_p3 = pnand %p702_p0, %p698_p4 }
 0x12b   : > { %706 = shalt.err (!%p703_p3)
}
 0x12c   : > { %558 = dma.vmem_to_hbm [thread:$0]  (%p845_p9), %s370_s8, 128, %s952_s23, %s354_s30  }
 0x12d PF: > { %s381_s18 = sand.u32 1, %s745_s12   ;;  %p1004_p13 = scmp.ge.s32.totalorder %s765_s17, 2 }
 0x12e   : > { %s382_s19 = scalar_lea.sflag [#allocation4], %s381_s18 }
 0x12f   : > { %p568_p5 = pnand %p1004_p13, %p852_p11 }
 0x131   : > { %p569_p12 = pneg %p568_p5 }
 0x133   : > { %740 = dma.done.wait (%p569_p12), %s382_s19, 128  }
 0x134   : > { %742 = vsyncadd (%p569_p12), %s382_s19, 4294967168  ;;  %s22_s17 = sadd.s32 1, %s765_s17   ;;  %s1005_s12 = smov %s749_s13 }
 0x135   : > { %p19_p6 = scmp.ge.s32.totalorder %s22_s17, 4   ;;  %s1006_s13 = smov %s753_s14 }
 0x136   : > { %s1007_s14 = smov %s850_s26  ;;  %s1008_s15 = smov %s761_s16 }
 0x137   : > { %s1009_s16 = smov %s1011_s20  ;;  %21 = sbr.rel (!%p19_p6) target bundleno = 8 (0x8), region = 93 }
 0x13c   :  { %387 = vsyncpa [#allocation3], 1 }
 0x13d   :  { %389 = vsyncpa [#allocation3 + $0x1], 1 }
 0x13e   :  { %390 = vsyncpa [#allocation6], 1 }
 0x13f   :  { %392 = vsyncpa [#allocation6 + $0x1], 1 }
 0x140   :  { %393 = vsyncpa [#allocation4], 1 }
 0x141   :  { %395 = vsyncpa [#allocation4 + $0x1], 1 }

</bundles_post_ra>
